<compile_context>
chip_gen: v6e
topology: v6e:2x2x1
jax: 0.10.0
libtpu: 0.0.40
codegen_flags: <defaults>
</compile_context>

<pallas_src>
import functools
import math

import jax
import jax.numpy as jnp
from jax import lax
from jax.experimental import pallas as pl
from jax.experimental.pallas import tpu as pltpu

LANES = 128
MAX_TILE_ROWS = 1024   # 1024x128 f32 = 512 KiB per input per buffer


def _detect_num_tensorcores():
    """Best-effort TensorCores-per-device count (1 on v5e/v6e, 2 on v7x/megacore)."""
    # TODO(synk): no stable public API for TC-per-device; default to 1 and pick
    # up a core count opportunistically where exposed.
    try:
        dev = jax.devices()[0]
        for attr in ("num_cores", "core_count"):
            v = getattr(dev, attr, None)
            if isinstance(v, int) and v >= 1:
                return max(1, min(2, v))
    except Exception:
        pass
    try:
        info = pltpu.get_tpu_info()
        for attr in ("num_cores", "num_tensorcores", "tensorcores_per_chip"):
            v = getattr(info, attr, None)
            if isinstance(v, int) and v >= 1:
                return max(1, min(2, v))
    except Exception:
        pass
    return 1


def _stat_names(need_bce, need_dice, need_focal):
    names = []
    if need_bce:
        names.append("bce")
    if need_dice:
        names += ["sig", "tgt", "sigt"]
    if need_focal:
        names.append("focal")
    return names


def _elem_stats(x, t, *, need_bce, need_dice, need_focal, gamma, eps, recip):
    """Per-element statistics on f32 arrays x, t (same shape).

    Returns a list of arrays in the order given by _stat_names(...).
    Shared transcendentals: one exp(-|x|); one log(1+e) reused by BCE & Focal.
    """
    stats = []
    e = jnp.exp(-jnp.abs(x))                         # single EUP exp / element
    log1pe = None
    if need_bce or need_focal:
        log1pe = jnp.log(1.0 + e)                    # single EUP log / element

    if need_bce:
        # stable BCE-with-logits: max(x,0) - x*t + log(1 + exp(-|x|))
        stats.append(jnp.maximum(x, 0.0) - x * t + log1pe)

    if need_dice:
        inv = recip(1.0 + e)
        sig = jnp.where(x >= 0.0, inv, e * inv)      # numerically-stable sigmoid
        stats.append(sig)
        stats.append(t)
        stats.append(sig * t)

    if need_focal:
        # log(clip(sigmoid(x), eps, 1-eps)) == clip(min(x,0)-log(1+e), log eps, log(1-eps))
        log_prob = jnp.clip(jnp.minimum(x, 0.0) - log1pe,
                            math.log(eps), math.log1p(-eps))
        g = gamma
        if isinstance(g, float) and g.is_integer():
            g = int(g)
        if g == 2:
            mod = jnp.square(1.0 - x)                # VPU multiplies, no EUP
        elif isinstance(g, int):
            mod = lax.integer_pow(1.0 - x, g)
        else:
            # TODO(synk): non-integer gamma keeps torch semantics (NaN for x>1).
            mod = (1.0 - x) ** g
        stats.append((-t) * log_prob * mod)

    return stats


# ---------------------------------------------------------------------------
# Fused reduction kernel: one HBM pass over (x, t), per-core resident
# accumulator of shape (n_stats*8, 128); stat s lives in rows [8s, 8s+8).
# ---------------------------------------------------------------------------
def _mix_reduce_kernel(x_ref, t_ref, acc_ref, *, steps_per_core, full_steps,
                       guard, need_bce, need_dice, need_focal, gamma, eps):
    step = pl.program_id(1)

    @pl.when(step == 0)
    def _init():
        acc_ref[...] = jnp.zeros_like(acc_ref)

    def _accumulate():
        x = x_ref[...].astype(jnp.float32)            # upcast in-kernel (bf16 ok)
        t = t_ref[...].astype(jnp.float32)
        stats = _elem_stats(
            x, t, need_bce=need_bce, need_dice=need_dice, need_focal=need_focal,
            gamma=gamma, eps=eps,
            recip=lambda v: pl.reciprocal(v, approx=True))
        tr = x.shape[0]
        for idx, stat in enumerate(stats):
            # (tr,128) -> (8,128) lane-wise partial: pure VPU adds, no XLU.
            part = stat.reshape(tr // 8, 8, LANES).sum(axis=0)
            acc_ref[pl.ds(idx * 8, 8), :] += part

    if guard:
        core = pl.program_id(0)
        pl.when(core * steps_per_core + step < full_steps)(_accumulate)
    else:
        _accumulate()


def _fused_stats(output, target, *, need_bce, need_dice, need_focal,
                 gamma, eps, tile_rows=MAX_TILE_ROWS, n_cores=None):
    """Single-pass sufficient statistics for BCE / Dice / Focal.

    Returns dict name -> f32 scalar sum over the *true* elements.
    """
    names = _stat_names(need_bce, need_dice, need_focal)
    n_stats = len(names)
    flags = dict(need_bce=need_bce, need_dice=need_dice, need_focal=need_focal,
                 gamma=gamma, eps=eps)

    total = int(output.size)
    x = output.reshape(-1)                 # native dtype: no wrapper cast/copy
    t = target.reshape(-1)

    pad128 = (-total) % LANES
    if pad128:
        # TODO(synk): rare unaligned path pays one pad copy to reach a lane
        # boundary; the pad-zero contribution is subtracted analytically below.
        x = jnp.pad(x, (0, pad128))
        t = jnp.pad(t, (0, pad128))
    rows = (total + pad128) // LANES
    x2 = x.reshape(rows, LANES)            # free reshape of contiguous data
    t2 = t.reshape(rows, LANES)

    # Sublane granule: 8 for 32-bit, 16 for 16-bit, 32 for 8-bit inputs.
    granule = max(8, 32 // x2.dtype.itemsize, 32 // t2.dtype.itemsize)
    tr = min(tile_rows, (rows // granule) * granule)
    full_steps = rows // tr if tr else 0
    covered = full_steps * tr

    sums = {name: jnp.float32(0.0) for name in names}

    if full_steps:
        if n_cores is None:
            n_cores = _detect_num_tensorcores()
        n_cores = max(1, min(int(n_cores), full_steps))
        spc = pl.cdiv(full_steps, n_cores)
        guard = (n_cores * spc != full_steps)

        if guard:
            in_map = lambda c, i: (jnp.minimum(c * spc + i, full_steps - 1), 0)
        else:
            in_map = lambda c, i: (c * spc + i, 0)

        acc = pl.pallas_call(
            functools.partial(_mix_reduce_kernel, steps_per_core=spc,
                              full_steps=full_steps, guard=guard, **flags),
            out_shape=jax.ShapeDtypeStruct((n_cores * n_stats * 8, LANES),
                                           jnp.float32),
            grid_spec=pltpu.PrefetchScalarGridSpec(
                num_scalar_prefetch=0,
                grid=(n_cores, spc),
                in_specs=[pl.BlockSpec((tr, LANES), in_map),   # logits tile
                          pl.BlockSpec((tr, LANES), in_map)],  # target tile
                out_specs=pl.BlockSpec((n_stats * 8, LANES), lambda c, i: (c, 0)),
            ),
            compiler_params=pltpu.CompilerParams(
                dimension_semantics=("parallel", "arbitrary")),
        )(x2, t2)

        per_stat = acc.reshape(n_cores, n_stats, 8, LANES).sum(axis=(0, 2, 3))
        for idx, name in enumerate(names):
            sums[name] = sums[name] + per_stat[idx]

    if covered < rows:
        # Ragged tail (< one tile of rows): tiny, done in plain JAX so the
        # kernel never touches out-of-bounds / unspecified data.
        tail_stats = _elem_stats(
            x2[covered:].astype(jnp.float32), t2[covered:].astype(jnp.float32),
            recip=lambda v: 1.0 / v, **flags)
        for name, arr in zip(names, tail_stats):
            sums[name] = sums[name] + jnp.sum(arr)

    if pad128:
        # Analytic correction for zero-padded elements (x=0, t=0):
        # bce contributes log(2) each, sigmoid 0.5 each, everything else 0.
        if need_bce:
            sums["bce"] = sums["bce"] - jnp.float32(pad128 * math.log(2.0))
        if need_dice:
            sums["sig"] = sums["sig"] - jnp.float32(pad128 * 0.5)
    return sums


# ---------------------------------------------------------------------------
# LovaszHinge (per_image=True, ignore=None) — plain-JAX glue.
# TODO(synk): the per-image descending sort (torch.sort) has no clean Pallas
# TPU equivalent; it stays in plain JAX. ignore-filtering needs dynamic shapes
# and is unsupported (ignore=None path only).
# ---------------------------------------------------------------------------
def _lovasz_grad(gt_sorted):
    gts = jnp.sum(gt_sorted)
    intersection = gts - jnp.cumsum(gt_sorted)
    union = gts + jnp.cumsum(1.0 - gt_sorted)
    jaccard = 1.0 - intersection / union
    if gt_sorted.shape[0] > 1:
        jaccard = jnp.concatenate([jaccard[:1], jaccard[1:] - jaccard[:-1]])
    return jaccard


def _lovasz_hinge_flat(logits, labels):
    signs = 2.0 * labels - 1.0
    errors = 1.0 - logits * signs
    order = jnp.argsort(-errors)                      # descending
    errors_sorted = errors[order]
    gt_sorted = labels[order]
    grad = _lovasz_grad(gt_sorted)
    act = jax.nn.elu(errors_sorted) + 1.0             # activation from the module
    return jnp.dot(act, grad)


def lovasz_hinge(logits, labels, per_image=True):
    lf = logits.astype(jnp.float32)
    tf = labels.astype(jnp.float32)
    if per_image:
        lf = lf.reshape(lf.shape[0], -1)
        tf = tf.reshape(tf.shape[0], -1)
        return jnp.mean(jax.vmap(_lovasz_hinge_flat)(lf, tf))
    return _lovasz_hinge_flat(lf.reshape(-1), tf.reshape(-1))


# ---------------------------------------------------------------------------
# MixLoss forward
# ---------------------------------------------------------------------------
def mix_loss(output, target, bce_w=1.0, dice_w=0.0, focal_w=0.0, lovasz_w=0.0,
             dice_smooth=1.0, dice_eps=1e-7, focal_gamma=2, focal_eps=1e-7,
             n_cores=None):
    total = int(output.size)
    need_bce, need_dice, need_focal = bool(bce_w), bool(dice_w), bool(focal_w)
    loss = jnp.float32(0.0)

    if need_bce or need_dice or need_focal:
        s = _fused_stats(output, target, need_bce=need_bce, need_dice=need_dice,
                         need_focal=need_focal, gamma=focal_gamma,
                         eps=focal_eps, n_cores=n_cores)
        if need_bce:
            loss = loss + jnp.float32(bce_w) * (s["bce"] / jnp.float32(total))
        if need_dice:
            n = jnp.float32(total)
            s_sig, s_t, s_st = s["sig"], s["tgt"], s["sigt"]
            # if sum(target)==0 the module flips output/target; flipped sums
            # are derivable from the same statistics.
            inter = jnp.where(s_t == 0, n - s_sig - s_t + s_st, s_st)
            denom = jnp.where(s_t == 0, (n - s_sig) + (n - s_t), s_sig + s_t)
            dice = 1.0 - (2.0 * inter + dice_smooth) / (denom + dice_smooth + dice_eps)
            loss = loss + jnp.float32(dice_w) * dice
        if need_focal:
            loss = loss + jnp.float32(focal_w) * s["focal"]

    if lovasz_w:
        loss = loss + jnp.float32(lovasz_w) * lovasz_hinge(output, target,
                                                           per_image=True)
    return loss


# ---------------------------------------------------------------------------
# Pure-JAX reference (correctness self-check)
# ---------------------------------------------------------------------------
def _ref_mix_loss(output, target, bce_w=1.0, dice_w=0.0, focal_w=0.0,
                  lovasz_w=0.0):
    x = output.astype(jnp.float32)
    t = target.astype(jnp.float32)
    loss = jnp.float32(0.0)
    if bce_w:
        bce = jnp.mean(jnp.maximum(x, 0.0) - x * t
                       + jnp.log(1.0 + jnp.exp(-jnp.abs(x))))
        loss = loss + bce_w * bce
    if dice_w:
        s = jax.nn.sigmoid(x)
        def dice_of(s_, t_):
            return 1.0 - (2.0 * jnp.sum(s_ * t_) + 1.0) / (
                jnp.sum(s_) + jnp.sum(t_) + 1.0 + 1e-7)
        dice = jnp.where(jnp.sum(t) == 0, dice_of(1.0 - s, 1.0 - t),
                         dice_of(s, t))
        loss = loss + dice_w * dice
    if focal_w:
        prob = jnp.clip(jax.nn.sigmoid(x), 1e-7, 1.0 - 1e-7)
        loss = loss + focal_w * jnp.sum(-t * jnp.log(prob) * (1.0 - x) ** 2)
    if lovasz_w:
        loss = loss + lovasz_w * lovasz_hinge(x, t, per_image=True)
    return loss


if __name__ == "__main__":
    key = jax.random.PRNGKey(0)
    k1, k2 = jax.random.split(key)

    N, C, H, W = 2, 4, 16, 16
    output = jax.random.normal(k1, (N, C, H, W), jnp.float32)
    target = jax.random.bernoulli(k2, 0.35, (N, C, H, W)).astype(jnp.float32)

    # Exercise all four components (Pallas kernel covers BCE/Dice/Focal).
    weights = dict(bce_w=1.0, dice_w=0.5, focal_w=0.25, lovasz_w=0.2)
    loss = jax.block_until_ready(mix_loss(output, target, **weights))
    ref = jax.block_until_ready(_ref_mix_loss(output, target, **weights))
    assert abs(float(loss) - float(ref)) <= 1e-4 * max(1.0, abs(float(ref))), (
        float(loss), float(ref))

    # Default MixLoss configuration (bce_w=1.0, others 0) — specialized BCE path.
    loss_d = jax.block_until_ready(mix_loss(output, target))
    ref_d = jax.block_until_ready(_ref_mix_loss(output, target, 1.0, 0.0, 0.0, 0.0))
    assert abs(float(loss_d) - float(ref_d)) <= 1e-4 * max(1.0, abs(float(ref_d))), (
        float(loss_d), float(ref_d))

    # bf16 logits streamed in native dtype (upcast inside the kernel).
    out_bf16 = output.astype(jnp.bfloat16)
    loss_b = jax.block_until_ready(mix_loss(out_bf16, target, **weights))
    ref_b = jax.block_until_ready(
        _ref_mix_loss(out_bf16.astype(jnp.float32), target, **weights))
    assert abs(float(loss_b) - float(ref_b)) <= 1e-3 * max(1.0, abs(float(ref_b))), (
        float(loss_b), float(ref_b))

    print("KERNEL_OK")
</pallas_src>

<mosaic_0001>
module attributes {stable_mosaic.version = 11 : i64} {
  func.func @_mix_reduce_kernel(%arg0: i32, %arg1: i32, %arg2: memref<16x128xf32, #tpu.memory_space<vmem>>, %arg3: memref<16x128xf32, #tpu.memory_space<vmem>>, %arg4: memref<40x128xf32, #tpu.memory_space<vmem>>) attributes {dimension_semantics = [#tpu.dimension_semantics<parallel>, #tpu.dimension_semantics<arbitrary>], iteration_bounds = array<i64: 1, 1>, scalar_prefetch = 0 : i64, scratch_operands = 0 : i64, tpu.core_type = #tpu.core_type<tc>, window_params = [{transform_indices = @transform_0, window_bounds = array<i64: 16, 128>}, {transform_indices = @transform_1, window_bounds = array<i64: 16, 128>}, {transform_indices = @transform_2, window_bounds = array<i64: 40, 128>}]} {
    %c0_i32 = arith.constant 0 : i32
    %0 = arith.cmpi eq, %arg1, %c0_i32 : i32
    %1 = arith.extui %0 : i1 to i32
    %c0_i32_0 = arith.constant 0 : i32
    %2 = arith.cmpi ne, %1, %c0_i32_0 : i32
    scf.if %2 {
      %cst_34 = arith.constant 0.000000e+00 : f32
      %64 = vector.broadcast %cst_34 : f32 to vector<40x128xf32>
      %c0_35 = arith.constant 0 : index
      %c0_36 = arith.constant 0 : index
      %65 = vector.load %arg4[%c0_35, %c0_36] : memref<40x128xf32, #tpu.memory_space<vmem>>, vector<40x128xf32>
      tpu.vector_store %arg4[%c0_35, %c0_36], %64 {strides = array<i32>} : memref<40x128xf32, #tpu.memory_space<vmem>>, vector<40x128xf32>,
    } else {
    }
    %c0 = arith.constant 0 : index
    %c0_1 = arith.constant 0 : index
    %3 = vector.load %arg2[%c0, %c0_1] : memref<16x128xf32, #tpu.memory_space<vmem>>, vector<16x128xf32>
    %c0_2 = arith.constant 0 : index
    %c0_3 = arith.constant 0 : index
    %4 = vector.load %arg3[%c0_2, %c0_3] : memref<16x128xf32, #tpu.memory_space<vmem>>, vector<16x128xf32>
    %5 = math.absf %3 : vector<16x128xf32>
    %cst = arith.constant 0.000000e+00 : f32
    %6 = vector.broadcast %cst : f32 to vector<16x128xf32>
    %7 = arith.subf %6, %5 : vector<16x128xf32>
    %8 = math.exp %7 : vector<16x128xf32>
    %cst_4 = arith.constant 1.000000e+00 : f32
    %9 = vector.broadcast %cst_4 : f32 to vector<16x128xf32>
    %10 = arith.addf %9, %8 : vector<16x128xf32>
    %11 = math.log %10 : vector<16x128xf32>
    %cst_5 = arith.constant 0.000000e+00 : f32
    %12 = vector.broadcast %cst_5 : f32 to vector<16x128xf32>
    %13 = arith.maximumf %3, %12 : vector<16x128xf32>
    %14 = arith.mulf %3, %4 : vector<16x128xf32>
    %15 = arith.subf %13, %14 : vector<16x128xf32>
    %16 = arith.addf %15, %11 : vector<16x128xf32>
    %cst_6 = arith.constant 1.000000e+00 : f32
    %17 = vector.broadcast %cst_6 : f32 to vector<16x128xf32>
    %18 = arith.addf %17, %8 : vector<16x128xf32>
    %19 = tpu.reciprocal %18 {approx = true} : vector<16x128xf32> -> vector<16x128xf32>
    %cst_7 = arith.constant 0.000000e+00 : f32
    %20 = vector.broadcast %cst_7 : f32 to vector<16x128xf32>
    %21 = arith.cmpf oge, %3, %20 : vector<16x128xf32>
    %22 = arith.mulf %8, %19 : vector<16x128xf32>
    %23 = arith.select %21, %19, %22 : vector<16x128xi1>, vector<16x128xf32>
    %24 = arith.mulf %23, %4 : vector<16x128xf32>
    %cst_8 = arith.constant 0.000000e+00 : f32
    %25 = vector.broadcast %cst_8 : f32 to vector<16x128xf32>
    %26 = arith.minimumf %3, %25 : vector<16x128xf32>
    %27 = arith.subf %26, %11 : vector<16x128xf32>
    %cst_9 = arith.constant -16.1180954 : f32
    %cst_10 = arith.constant -1.00000008E-7 : f32
    %28 = vector.broadcast %cst_9 : f32 to vector<16x128xf32>
    %29 = arith.maximumf %28, %27 : vector<16x128xf32>
    %30 = vector.broadcast %cst_10 : f32 to vector<16x128xf32>
    %31 = arith.minimumf %30, %29 : vector<16x128xf32>
    %cst_11 = arith.constant 1.000000e+00 : f32
    %32 = vector.broadcast %cst_11 : f32 to vector<16x128xf32>
    %33 = arith.subf %32, %3 : vector<16x128xf32>
    %34 = arith.mulf %33, %33 : vector<16x128xf32>
    %cst_12 = arith.constant 0.000000e+00 : f32
    %35 = vector.broadcast %cst_12 : f32 to vector<16x128xf32>
    %36 = arith.subf %35, %4 : vector<16x128xf32>
    %37 = arith.mulf %36, %31 : vector<16x128xf32>
    %38 = arith.mulf %37, %34 : vector<16x128xf32>
    %39 = vector.shape_cast %16 : vector<16x128xf32> to vector<2x8x128xf32>
    %cst_13 = arith.constant dense<0.000000e+00> : vector<8x128xf32>
    %40 = vector.multi_reduction <add>, %39, %cst_13 [0] : vector<2x8x128xf32> to vector<8x128xf32>
    %c0_14 = arith.constant 0 : index
    %c0_15 = arith.constant 0 : index
    %41 = vector.load %arg4[%c0_14, %c0_15] : memref<40x128xf32, #tpu.memory_space<vmem>>, vector<8x128xf32>
    %42 = arith.addf %41, %40 : vector<8x128xf32>
    %c0_16 = arith.constant 0 : index
    %c0_17 = arith.constant 0 : index
    %43 = vector.load %arg4[%c0_16, %c0_17] : memref<40x128xf32, #tpu.memory_space<vmem>>, vector<8x128xf32>
    tpu.vector_store %arg4[%c0_16, %c0_17], %42 {strides = array<i32>} : memref<40x128xf32, #tpu.memory_space<vmem>>, vector<8x128xf32>,
    %44 = vector.shape_cast %23 : vector<16x128xf32> to vector<2x8x128xf32>
    %cst_18 = arith.constant dense<0.000000e+00> : vector<8x128xf32>
    %45 = vector.multi_reduction <add>, %44, %cst_18 [0] : vector<2x8x128xf32> to vector<8x128xf32>
    %c8 = arith.constant 8 : index
    %c0_19 = arith.constant 0 : index
    %46 = vector.load %arg4[%c8, %c0_19] : memref<40x128xf32, #tpu.memory_space<vmem>>, vector<8x128xf32>
    %47 = arith.addf %46, %45 : vector<8x128xf32>
    %c8_20 = arith.constant 8 : index
    %c0_21 = arith.constant 0 : index
    %48 = vector.load %arg4[%c8_20, %c0_21] : memref<40x128xf32, #tpu.memory_space<vmem>>, vector<8x128xf32>
    tpu.vector_store %arg4[%c8_20, %c0_21], %47 {strides = array<i32>} : memref<40x128xf32, #tpu.memory_space<vmem>>, vector<8x128xf32>,
    %49 = vector.shape_cast %4 : vector<16x128xf32> to vector<2x8x128xf32>
    %cst_22 = arith.constant dense<0.000000e+00> : vector<8x128xf32>
    %50 = vector.multi_reduction <add>, %49, %cst_22 [0] : vector<2x8x128xf32> to vector<8x128xf32>
    %c16 = arith.constant 16 : index
    %c0_23 = arith.constant 0 : index
    %51 = vector.load %arg4[%c16, %c0_23] : memref<40x128xf32, #tpu.memory_space<vmem>>, vector<8x128xf32>
    %52 = arith.addf %51, %50 : vector<8x128xf32>
    %c16_24 = arith.constant 16 : index
    %c0_25 = arith.constant 0 : index
    %53 = vector.load %arg4[%c16_24, %c0_25] : memref<40x128xf32, #tpu.memory_space<vmem>>, vector<8x128xf32>
    tpu.vector_store %arg4[%c16_24, %c0_25], %52 {strides = array<i32>} : memref<40x128xf32, #tpu.memory_space<vmem>>, vector<8x128xf32>,
    %54 = vector.shape_cast %24 : vector<16x128xf32> to vector<2x8x128xf32>
    %cst_26 = arith.constant dense<0.000000e+00> : vector<8x128xf32>
    %55 = vector.multi_reduction <add>, %54, %cst_26 [0] : vector<2x8x128xf32> to vector<8x128xf32>
    %c24 = arith.constant 24 : index
    %c0_27 = arith.constant 0 : index
    %56 = vector.load %arg4[%c24, %c0_27] : memref<40x128xf32, #tpu.memory_space<vmem>>, vector<8x128xf32>
    %57 = arith.addf %56, %55 : vector<8x128xf32>
    %c24_28 = arith.constant 24 : index
    %c0_29 = arith.constant 0 : index
    %58 = vector.load %arg4[%c24_28, %c0_29] : memref<40x128xf32, #tpu.memory_space<vmem>>, vector<8x128xf32>
    tpu.vector_store %arg4[%c24_28, %c0_29], %57 {strides = array<i32>} : memref<40x128xf32, #tpu.memory_space<vmem>>, vector<8x128xf32>,
    %59 = vector.shape_cast %38 : vector<16x128xf32> to vector<2x8x128xf32>
    %cst_30 = arith.constant dense<0.000000e+00> : vector<8x128xf32>
    %60 = vector.multi_reduction <add>, %59, %cst_30 [0] : vector<2x8x128xf32> to vector<8x128xf32>
    %c32 = arith.constant 32 : index
    %c0_31 = arith.constant 0 : index
    %61 = vector.load %arg4[%c32, %c0_31] : memref<40x128xf32, #tpu.memory_space<vmem>>, vector<8x128xf32>
    %62 = arith.addf %61, %60 : vector<8x128xf32>
    %c32_32 = arith.constant 32 : index
    %c0_33 = arith.constant 0 : index
    %63 = vector.load %arg4[%c32_32, %c0_33] : memref<40x128xf32, #tpu.memory_space<vmem>>, vector<8x128xf32>
    tpu.vector_store %arg4[%c32_32, %c0_33], %62 {strides = array<i32>} : memref<40x128xf32, #tpu.memory_space<vmem>>, vector<8x128xf32>,
    return
  }
  func.func @transform_0(%arg0: i32, %arg1: i32) -> (i32, i32) {
    %c1_i32 = arith.constant 1 : i32
    %0 = arith.muli %arg0, %c1_i32 : i32
    %1 = arith.addi %0, %arg1 : i32
    %c0_i32 = arith.constant 0 : i32
    %c0_i32_0 = arith.constant 0 : i32
    return %1, %c0_i32 : i32, i32
  }
  func.func @transform_1(%arg0: i32, %arg1: i32) -> (i32, i32) {
    %c1_i32 = arith.constant 1 : i32
    %0 = arith.muli %arg0, %c1_i32 : i32
    %1 = arith.addi %0, %arg1 : i32
    %c0_i32 = arith.constant 0 : i32
    %c0_i32_0 = arith.constant 0 : i32
    return %1, %c0_i32 : i32, i32
  }
  func.func @transform_2(%arg0: i32, %arg1: i32) -> (i32, i32) {
    %c0_i32 = arith.constant 0 : i32
    %c0_i32_0 = arith.constant 0 : i32
    return %arg0, %c0_i32 : i32, i32
  }
}

</mosaic_0001>

<bundles_post_ra>
// kernel: tpu_custom_call.1
= control target key start
LH: loop header
LB: loop body
LE: loop exit
PB: predicated region body
PF: predicated region fallthrough
CT: control target
= control target key end

     0   :  { %7 = vsyncpa [#allocation3], 0  ;;  %s275_s0 = inlined_call_operand.hbm [shape: f32[16,128], index: 0, kind: input, shape index: {}]   ;;  %s276_s1 = inlined_call_operand.hbm [shape: f32[16,128], index: 1, kind: input, shape index: {}]   ;;  %s277_s2 = inlined_call_operand.hbm [shape: f32[40,128], index: 2, kind: output, shape index: {}]  }
   0x1   :  { %8 = vsyncpa [#allocation6], 0 }
   0x2   :  { %9 = vsyncpa [#allocation4], 0  ;;  %s237_s9 = smov [#allocation2]  }
   0x3   :  { %s19_s10 = sshll.u32 %s237_s9, 4  ;;  %s20_s10 = int_to_ptr.vmem [resolvable:$true] %s19_s10 }
   0x4   :  { %s179_s11 = scalar_lea.vmem %s20_s10, 256  ;;  %p184_p1 = scmp.lt.s32.totalorder %s20_s10, %s20_s10 }
   0x5   :  { %p180_p0 = scmp.ne.s32.totalorder %s20_s10, %s179_s11  ;;  %p185_p2 = scmp.lt.s32.totalorder %s179_s11, %s179_s11 }
   0x7   :  { %p186_p3 = por %p185_p2, %p184_p1 }
   0x9   :  { %p187_p4 = pnand %p186_p3, %p180_p0 }
   0xb   :  { %190 = shalt.err (!%p187_p4)
}
   0xc   :  { %s238_s12 = smov 128   ;;  %s239_s13 = smov 8  }
   0xd   :  { %25 = dma.hbm_to_vmem [thread:$0]  %s275_s0, 256, %s20_s10, [#allocation3], %s238_s12, %s238_s12, %s239_s13  }
   0xe   :  { %s240_s16 = smov [#allocation5]  }
   0xf   :  { %s35_s17 = sshll.u32 %s240_s16, 4  ;;  %s36_s17 = int_to_ptr.vmem [resolvable:$true] %s35_s17 }
  0x10   :  { %s199_s18 = scalar_lea.vmem %s36_s17, 256  ;;  %p204_p6 = scmp.lt.s32.totalorder %s36_s17, %s36_s17 }
  0x11   :  { %p200_p5 = scmp.ne.s32.totalorder %s36_s17, %s199_s18  ;;  %p205_p7 = scmp.lt.s32.totalorder %s199_s18, %s199_s18 }
  0x13   :  { %p206_p8 = por %p205_p7, %p204_p6 }
  0x15   :  { %p207_p9 = pnand %p206_p8, %p200_p5 }
  0x17   :  { %210 = shalt.err (!%p207_p9)
}
  0x18   :  { %41 = dma.hbm_to_vmem [thread:$0]  %s276_s1, 256, %s36_s17, [#allocation6], %s238_s12, %s238_s12, %s239_s13  }
  0x19   :  { %231 = dma.done.wait [#allocation3], 256  }
  0x1a   :  { %232 = vsyncadd [#allocation3], 4294967040 }
  0x1b   :  { %233 = dma.done.wait [#allocation6], 256  }
  0x1c   :  { %234 = vsyncadd [#allocation6], 4294967040  ;;  %v61_v0 = vld [vmem:[#allocation2] sm:$0xff]  ;;  %v62_v1 = vld [vmem:[#allocation2 + $0x8] sm:$0xff]  ;;  %s241_s0 = smov [#allocation7]  }
  0x1d   :  { %v65_v2 = vand.u32 2147483647, %v61_v0  ;;  %v66_v3 = vand.u32 2147483647, %v62_v1  ;;  %v63_v4 = vld [vmem:[#allocation5] sm:$0xff]  ;;  %v64_v5 = vld [vmem:[#allocation5 + $0x8] sm:$0xff] }
  0x1e   :  { %v123_v8 = vadd.f32 %v64_v5, %v63_v4  ;;  %v79_v15 = vmax.f32 %v61_v0, 0.0  ;;  %v81_v16 = vmul.f32 %v63_v4, %v61_v0  ;;  %v80_v17 = vmax.f32 %v62_v1, 0.0  ;;  %s140_s1 = sshll.u32 %s241_s0, 4  ;;  %s141_s1 = int_to_ptr.vmem [resolvable:$true] %s140_s1 }
  0x1f   :  { %v67_v6 = vsub.f32 0.0, %v65_v2  ;;  %v68_v7 = vsub.f32 0.0, %v66_v3  ;;  %v82_v18 = vmul.f32 %v64_v5, %v62_v1  ;;  %v97_v20 = vmin.f32 %v61_v0, 0.0  ;;  %s211_s21 = scalar_lea.vmem %s141_s1, 640  ;;  %p216_p11 = scmp.lt.s32.totalorder %s141_s1, %s141_s1 }
  0x20   :  { %126 = vst [vmem:[#allocation7 + $0x10] sm:$0xff] %v123_v8  ;;  %v83_v19 = vsub.f32 %v79_v15, %v81_v16  ;;  %v98_v23 = vmin.f32 %v62_v1, 0.0  ;;  %vm89_vm0 = vcmp.ge.f32.partialorder %v61_v0, 0.0  ;;  %vm90_vm1 = vcmp.ge.f32.partialorder %v62_v1, 0.0  ;;  %p212_p10 = scmp.ne.s32.totalorder %s141_s1, %s211_s21  ;;  %p217_p12 = scmp.lt.s32.totalorder %s211_s21, %s211_s21 }
  0x21   :  { %v69_v9 = vmul.f32 1.442695, %v67_v6  ;;  %v71_v10 = vmul.f32 1.442695, %v68_v7  ;;  %v84_v22 = vsub.f32 %v80_v17, %v82_v18  ;;  %v105_v32 = vsub.f32 1.0, %v61_v0 }
  0x22   :  { %v106_v36 = vsub.f32 1.0, %v62_v1  ;;  %v109_v39 = vsub.f32 0.0, %v63_v4  ;;  %v110_v40 = vsub.f32 0.0, %v64_v5  ;;  %p218_p13 = por %p217_p12, %p216_p11 }
  0x23   :  { %159 = vpow2.f32 %v69_v9  ;;  %v107_v48 = vmul.f32 %v105_v32, %v105_v32 }
  0x24   :  { %161 = vpow2.f32 %v71_v10  ;;  %v108_v50 = vmul.f32 %v106_v36, %v106_v36  ;;  %p219_p0 = pnand %p218_p13, %p212_p10 }
  0x30   :  { %v160_v11 = vpop.eup %159 }
  0x31   :  { %v162_v12 = vpop.eup %161  ;;  %v73_v13 = vadd.f32 1.0, %v160_v11 }
  0x32   :  { %v74_v14 = vadd.f32 1.0, %v162_v12 }
  0x33   :  { %163 = vlog2.f32 %v73_v13 }
  0x34   :  { %165 = vlog2.f32 %v74_v14 }
  0x35   :  { %167 = vrcp.f32 %v73_v13 }
  0x36   :  { %169 = vrcp.f32 %v74_v14 }
  0x40   :  { %v164_v21 = vpop.eup %163 }
  0x41   :  { %v166_v24 = vpop.eup %165  ;;  %v76_v25 = vmul.f32 0.6931472, %v164_v21 }
  0x42   :  { %v168_v26 = vpop.eup %167  ;;  %v78_v27 = vmul.f32 0.6931472, %v166_v24 }
  0x43   :  { %v170_v28 = vpop.eup %169  ;;  %v85_v29 = vadd.f32 %v83_v19, %v76_v25  ;;  %v99_v30 = vsub.f32 %v97_v20, %v76_v25  ;;  %v91_v31 = vmul.f32 %v168_v26, %v160_v11 }
  0x44   :  { %v86_v33 = vadd.f32 %v84_v22, %v78_v27  ;;  %v100_v34 = vsub.f32 %v98_v23, %v78_v27  ;;  %v92_v35 = vmul.f32 %v170_v28, %v162_v12 }
  0x45   :  { %v93_v37 = vsel %vm89_vm0, %v168_v26, %v91_v31  ;;  %v101_v38 = vmax.f32 %v99_v30, -16.118095 }
  0x46   :  { %v115_v41 = vadd.f32 %v86_v33, %v85_v29  ;;  %v94_v42 = vsel %vm90_vm1, %v170_v28, %v92_v35  ;;  %v95_v43 = vmul.f32 %v93_v37, %v63_v4  ;;  %v102_v44 = vmax.f32 %v100_v34, -16.118095 }
  0x47   :  { %v119_v45 = vadd.f32 %v94_v42, %v93_v37  ;;  %v96_v46 = vmul.f32 %v94_v42, %v64_v5  ;;  %v103_v47 = vmin.f32 %v101_v38, -1.0000001e-07 }
  0x48   :  { %v104_v49 = vmin.f32 %v102_v44, -1.0000001e-07  ;;  %118 = vst [vmem:[#allocation7] sm:$0xff] %v115_v41 }
  0x49   :  { %v127_v51 = vadd.f32 %v96_v46, %v95_v43  ;;  %v111_v52 = vmul.f32 %v109_v39, %v103_v47  ;;  %122 = vst [vmem:[#allocation7 + $0x8] sm:$0xff] %v119_v45 }
  0x4a   :  { %v112_v53 = vmul.f32 %v110_v40, %v104_v49 }
  0x4b   :  { %v113_v54 = vmul.f32 %v111_v52, %v107_v48  ;;  %130 = vst [vmem:[#allocation7 + $0x18] sm:$0xff] %v127_v51 }
  0x4c   :  { %v114_v55 = vmul.f32 %v112_v53, %v108_v50 }
  0x4e   :  { %v131_v56 = vadd.f32 %v114_v55, %v113_v54 }
  0x50   :  { %134 = vst [vmem:[#allocation7 + $0x20] sm:$0xff] %v131_v56 }
  0x51   :  { %222 = shalt.err (!%p219_p0)
}
  0x52   :  { %146 = dma.vmem_to_hbm [thread:$0]  %s141_s1, 640, %s277_s2, [#allocation4], %s238_s12, %s238_s12, %s239_s13  }
  0x53   :  { %235 = dma.done.wait [#allocation4], 640  }
  0x54   :  { %236 = vsyncadd [#allocation4], 4294966656 }
  0x55   :  { %150 = vsyncpa [#allocation3], 1 }
  0x56   :  { %151 = vsyncpa [#allocation6], 1 }
  0x57   :  { %152 = vsyncpa [#allocation4], 1 }

</bundles_post_ra>
